<compile_context>
chip_gen: v7x
topology: tpu7x:2x2x1
jax: 0.10.0
libtpu: 0.0.40
codegen_flags: <defaults>
</compile_context>

<pallas_src>
import jax
import jax.numpy as jnp
from jax.experimental import pallas as pl
from jax.experimental.pallas import tpu as pltpu


def _round_up(x, m):
    return ((x + m - 1) // m) * m


# ----------------------------- kernels --------------------------------------


def feature_transform_kernel(x_ref, w1_ref, xw_ref):
    # XW = X @ W1 : bf16 MXU operands, f32 accumulation, bf16 result (lane-
    # dense f_pad-wide output -> unmasked stores).
    xw = jnp.dot(x_ref[...], w1_ref[...], preferred_element_type=jnp.float32)
    xw_ref[...] = xw.astype(xw_ref.dtype)


def gcn_aggregate_kernel(adj_ref, xw_ref, b1_ref, w2_ref, b2_ref, out_ref,
                         acc_ref):
    # One (i, k) grid step: accumulate A_hat[i-tile, k-tile] @ XW[k-tile] into
    # a resident f32 accumulator; run the fused epilogue on the last k step.
    k = pl.program_id(1)

    @pl.when(k == 0)
    def _init():
        acc_ref[...] = jnp.zeros_like(acc_ref)

    acc_ref[...] += jnp.dot(adj_ref[...], xw_ref[...],
                            preferred_element_type=jnp.float32)

    @pl.when(k == pl.num_programs(1) - 1)
    def _epilogue():
        # H = relu(A_hat @ XW + b1)   (f32 accumulate / epilogue).
        h = jnp.maximum(acc_ref[...] + b1_ref[...], 0.0)
        # fc: logits over the lane-padded (128-wide) class dim. Padded classes
        # have zero weights and a -1e30 bias, so exp() of them is exactly 0
        # and they never perturb the max/sum below.
        logits = jnp.dot(h.astype(jnp.bfloat16), w2_ref[...],
                         preferred_element_type=jnp.float32) + b2_ref[...]
        # log_softmax over the class dim (dim=1), max-stabilized, all in f32.
        m = jnp.max(logits, axis=-1, keepdims=True)
        z = logits - m
        lse = jnp.log(jnp.sum(jnp.exp(z), axis=-1, keepdims=True))
        out_ref[...] = z - lse


# ----------------------------- planning --------------------------------------


def gcn_plan(n, f, c, *, tile_m=None, tile_k=None):
    """Per-TPU-generation tiling / padding plan (VMEM-aware)."""
    try:
        vmem_cap = int(getattr(pltpu.get_tpu_info(), "vmem_capacity_bytes",
                               64 << 20))
    except Exception:
        vmem_cap = 64 << 20  # conservative fallback (v7x-sized)

    if vmem_cap >= (100 << 20):          # v5e / v6e: 128 MiB VMEM, 1 TC
        dflt_tm, dflt_tk = 1024, 512
        vmem_limit = 100 << 20
    else:                                # v7x: 64 MiB VMEM, 2 TCs
        dflt_tm, dflt_tk = 512, 512
        vmem_limit = 48 << 20

    tile_m = dflt_tm if tile_m is None else tile_m
    tile_k = dflt_tk if tile_k is None else tile_k
    # Clamp for small graphs; keep bf16 (16, 128) tiling constraints satisfied.
    tile_m = min(tile_m, _round_up(n, 16))
    tile_k = min(tile_k, _round_up(n, 128))

    return dict(
        n=n, f=f, c=c,
        tile_m=tile_m, tile_k=tile_k,
        n_rows_pad=_round_up(n, tile_m),     # rows padded to the M tile
        n_cols_pad=_round_up(n, tile_k),     # cols padded only to the K tile
        f_pad=_round_up(f, 128),
        c_pad=_round_up(c, 128),
        vmem_limit_bytes=vmem_limit,
    )


# ----------------------------- wrapper ---------------------------------------


def gcn_net_forward(x, adj_p, w1_t, b1, w2_t, b2, *, plan=None):
    """Forward pass of Net: log_softmax(fc(relu(GCNConv(x))), dim=1).

    x      : [N, F] f32 node features
    adj_p  : [n_rows_pad, n_cols_pad] bf16 normalized adjacency, already in
             padded kernel layout (build once via build_normalized_adjacency
             with rows=/cols=/dtype=bf16 -- mirrors GCNConv(cached=True))
    w1_t   : [F, F] f32 GCNConv weight, pre-transposed (in_features first)
    b1     : [1, F] f32 GCNConv bias
    w2_t   : [F, C] f32 fc weight, pre-transposed
    b2     : [1, C] f32 fc bias
    returns: [N, C] f32 log-probabilities
    """
    n, f = x.shape
    c = w2_t.shape[1]
    if plan is None:
        plan = gcn_plan(n, f, c)
    tile_m, tile_k = plan["tile_m"], plan["tile_k"]
    n_rows_pad, n_cols_pad = plan["n_rows_pad"], plan["n_cols_pad"]
    f_pad, c_pad = plan["f_pad"], plan["c_pad"]

    assert adj_p.shape == (n_rows_pad, n_cols_pad), (adj_p.shape, plan)
    if adj_p.dtype != jnp.bfloat16:          # only casts on the uncached path
        adj_p = adj_p.astype(jnp.bfloat16)

    # Small operands: pad + cast (F -> f_pad lanes, C -> c_pad lanes). These
    # are O(N*F) / O(F^2), negligible next to the N^2 adjacency stream.
    x_p = jnp.zeros((n_cols_pad, f_pad), jnp.bfloat16).at[:n, :f].set(
        x.astype(jnp.bfloat16))
    w1_p = jnp.zeros((f_pad, f_pad), jnp.bfloat16).at[:f, :f].set(
        w1_t.astype(jnp.bfloat16))
    b1_p = jnp.zeros((1, f_pad), jnp.float32).at[0, :f].set(
        b1.reshape(-1).astype(jnp.float32))
    w2_p = jnp.zeros((f_pad, c_pad), jnp.bfloat16).at[:f, :c].set(
        w2_t.astype(jnp.bfloat16))
    b2_p = jnp.full((1, c_pad), -1e30, jnp.float32).at[0, :c].set(
        b2.reshape(-1).astype(jnp.float32))

    cparams1 = pltpu.CompilerParams(
        dimension_semantics=("parallel",),
        vmem_limit_bytes=plan["vmem_limit_bytes"],
    )
    cparams2 = pltpu.CompilerParams(
        dimension_semantics=("parallel", "arbitrary"),
        vmem_limit_bytes=plan["vmem_limit_bytes"],
    )

    # Stage 1: XW = X @ W1, tiled over rows with the same tile as the stage-2
    # K axis so stage 2 can stream XW k-block by k-block.
    # TODO(synk): for demo-scale graphs, fuse this into stage 2 (recompute XW
    # per M tile) to drop one pallas_call launch and the XW HBM round trip.
    xw = pl.pallas_call(
        feature_transform_kernel,
        out_shape=jax.ShapeDtypeStruct((n_cols_pad, f_pad), jnp.bfloat16),
        grid=(n_cols_pad // tile_k,),
        in_specs=[
            pl.BlockSpec((tile_k, f_pad), lambda i: (i, 0)),
            pl.BlockSpec((f_pad, f_pad), lambda i: (0, 0)),
        ],
        out_specs=pl.BlockSpec((tile_k, f_pad), lambda i: (i, 0)),
        compiler_params=cparams1,
    )(x_p, w1_p)

    # Stage 2: (M, K)-tiled aggregation + bias + relu + fc + log_softmax.
    # Per-step VMEM is bounded independent of N:
    #   2*tile_m*tile_k*2B (adj) + 2*tile_k*f_pad*2B (XW) + tiny weights
    #   + 2*tile_m*c_pad*4B (out) + tile_m*f_pad*4B (acc)  ->  a few MiB.
    # NOTE: the constant-index operands (b1/W2/b2) are <100 KiB each now that
    # XW streams, so pipeline_mode=pl.Buffered(1) on them buys almost nothing.
    out_p = pl.pallas_call(
        gcn_aggregate_kernel,
        out_shape=jax.ShapeDtypeStruct((n_rows_pad, c_pad), jnp.float32),
        grid=(n_rows_pad // tile_m, n_cols_pad // tile_k),
        in_specs=[
            pl.BlockSpec((tile_m, tile_k), lambda i, k: (i, k)),  # A_hat tile
            pl.BlockSpec((tile_k, f_pad), lambda i, k: (k, 0)),   # XW k-tile
            pl.BlockSpec((1, f_pad), lambda i, k: (0, 0)),        # b1
            pl.BlockSpec((f_pad, c_pad), lambda i, k: (0, 0)),    # W2 (padded)
            pl.BlockSpec((1, c_pad), lambda i, k: (0, 0)),        # b2 (padded)
        ],
        out_specs=pl.BlockSpec((tile_m, c_pad), lambda i, k: (i, 0)),
        scratch_shapes=[pltpu.VMEM((tile_m, f_pad), jnp.float32)],
        compiler_params=cparams2,
    )(adj_p, xw, b1_p, w2_p, b2_p)

    return out_p[:n, :c]


def build_normalized_adjacency(edge_index, edge_weight, num_nodes, *,
                               rows=None, cols=None, dtype=jnp.float32):
    """PyG gcn_norm with add_self_loops=True.

    A_hat[dst, src] = deg^-1/2[dst] * w * deg^-1/2[src], deg from incoming
    edge weights (including self loops).  `rows`/`cols`/`dtype` let the caller
    build the kernel's padded bf16 layout directly, ONCE (GCNConv cached=True),
    so the per-forward path never re-reads the f32 N x N matrix."""
    rows = num_nodes if rows is None else rows
    cols = num_nodes if cols is None else cols
    src, dst = edge_index[0], edge_index[1]
    self_idx = jnp.arange(num_nodes, dtype=edge_index.dtype)
    src = jnp.concatenate([src, self_idx])
    dst = jnp.concatenate([dst, self_idx])
    w = jnp.concatenate([edge_weight.astype(jnp.float32),
                         jnp.ones((num_nodes,), jnp.float32)])
    deg = jnp.zeros((num_nodes,), jnp.float32).at[dst].add(w)
    dis = jnp.where(deg > 0, 1.0 / jnp.sqrt(deg), 0.0)
    norm = dis[dst] * w * dis[src]
    adj = jnp.zeros((rows, cols), jnp.float32).at[dst, src].add(norm)
    return adj.astype(dtype)


if __name__ == "__main__":
    # Small synthetic "Planetoid-like" problem.
    N = 64          # nodes
    F = 32          # num_features (GCNConv is F -> F)
    C = 8           # num_classes
    E = 256         # directed edges

    key = jax.random.PRNGKey(0)
    k_x, k_e, k_w, k_w1, k_b1, k_w2, k_b2 = jax.random.split(key, 7)

    # Node features (row-normalized, mimicking T.NormalizeFeatures()).
    x = jax.random.uniform(k_x, (N, F), jnp.float32)
    x = x / jnp.clip(jnp.sum(x, axis=1, keepdims=True), 1e-12)

    # Random graph.
    edge_index = jax.random.randint(k_e, (2, E), 0, N, dtype=jnp.int32)
    edge_weight = jax.random.uniform(k_w, (E,), jnp.float32)

    # Deterministic parameter init.
    # GCNConv weight: Linear(F, F, bias=False) -> torch weight [F_out, F_in];
    # kernel takes it pre-transposed as [F_in, F_out].
    w1 = jax.random.normal(k_w1, (F, F), jnp.float32) * (1.0 / jnp.sqrt(F))
    w1_t = w1.T
    b1 = jax.random.normal(k_b1, (1, F), jnp.float32) * 0.01
    # fc: Linear(F, C) -> torch weight [C, F]; pass transposed [F, C].
    w2 = jax.random.normal(k_w2, (C, F), jnp.float32) * (1.0 / jnp.sqrt(F))
    w2_t = w2.T
    b2 = jax.random.normal(k_b2, (1, C), jnp.float32) * 0.01

    # One-time (cached) padded bf16 adjacency, built directly in kernel layout.
    plan = gcn_plan(N, F, C)
    adj_p = build_normalized_adjacency(
        edge_index, edge_weight, N,
        rows=plan["n_rows_pad"], cols=plan["n_cols_pad"], dtype=jnp.bfloat16)

    out = gcn_net_forward(x, adj_p, w1_t, b1, w2_t, b2, plan=plan)
    out = jax.block_until_ready(out)

    # Sanity 1: rows of exp(log_softmax) sum to 1.
    row_sums = jnp.sum(jnp.exp(out), axis=1)
    assert out.shape == (N, C)
    assert bool(jnp.allclose(row_sums, 1.0, atol=1e-3))

    # Sanity 2: matches a pure-f32 JAX reference (loose tolerance for the
    # bf16 MXU operands).
    adj_ref = build_normalized_adjacency(edge_index, edge_weight, N)
    xw_ref = x @ w1_t
    h_ref = jnp.maximum(adj_ref @ xw_ref + b1, 0.0)
    logits_ref = h_ref @ w2_t + b2
    ref = logits_ref - jax.scipy.special.logsumexp(
        logits_ref, axis=1, keepdims=True)
    assert bool(jnp.allclose(out, ref, atol=5e-2, rtol=5e-2))

    print("KERNEL_OK")
</pallas_src>

<mosaic_0001>
module attributes {stable_mosaic.version = 11 : i64} {
  func.func @feature_transform_kernel(%arg0: i32, %arg1: memref<128x128xbf16, #tpu.memory_space<vmem>>, %arg2: memref<128x128xbf16, #tpu.memory_space<vmem>>, %arg3: memref<128x128xbf16, #tpu.memory_space<vmem>>) attributes {dimension_semantics = [#tpu.dimension_semantics<parallel>], iteration_bounds = array<i64: 1>, scalar_prefetch = 0 : i64, scratch_operands = 0 : i64, tpu.core_type = #tpu.core_type<tc>, window_params = [{transform_indices = @transform_0, window_bounds = array<i64: 128, 128>}, {pipeline_mode = #tpu.pipeline_mode<synchronous>, transform_indices = @transform_1, window_bounds = array<i64: 128, 128>}, {transform_indices = @transform_2, window_bounds = array<i64: 128, 128>}]} {
    %c0 = arith.constant 0 : index
    %c0_0 = arith.constant 0 : index
    %0 = vector.load %arg1[%c0, %c0_0] : memref<128x128xbf16, #tpu.memory_space<vmem>>, vector<128x128xbf16>
    %c0_1 = arith.constant 0 : index
    %c0_2 = arith.constant 0 : index
    %1 = vector.load %arg2[%c0_1, %c0_2] : memref<128x128xbf16, #tpu.memory_space<vmem>>, vector<128x128xbf16>
    %cst = arith.constant dense<0.000000e+00> : vector<128x128xf32>
    %2 = tpu.matmul %0, %1, %cst {dimension_numbers = #tpu.dot_dimension_numbers<[1], [0], [0], [1], [0, 0, 1, 1], [], []>} : vector<128x128xbf16>, vector<128x128xbf16>, vector<128x128xf32> -> vector<128x128xf32>
    %3 = arith.truncf %2 : vector<128x128xf32> to vector<128x128xbf16>
    %c0_3 = arith.constant 0 : index
    %c0_4 = arith.constant 0 : index
    %4 = vector.load %arg3[%c0_3, %c0_4] : memref<128x128xbf16, #tpu.memory_space<vmem>>, vector<128x128xbf16>
    tpu.vector_store %arg3[%c0_3, %c0_4], %3 {strides = array<i32>} : memref<128x128xbf16, #tpu.memory_space<vmem>>, vector<128x128xbf16>,
    return
  }
  func.func @transform_0(%arg0: i32) -> (i32, i32) {
    %c0_i32 = arith.constant 0 : i32
    %c0_i32_0 = arith.constant 0 : i32
    return %arg0, %c0_i32 : i32, i32
  }
  func.func @transform_1(%arg0: i32) -> (i32, i32) {
    %c0_i32 = arith.constant 0 : i32
    %c0_i32_0 = arith.constant 0 : i32
    %c0_i32_1 = arith.constant 0 : i32
    return %c0_i32, %c0_i32_0 : i32, i32
  }
  func.func @transform_2(%arg0: i32) -> (i32, i32) {
    %c0_i32 = arith.constant 0 : i32
    %c0_i32_0 = arith.constant 0 : i32
    return %arg0, %c0_i32 : i32, i32
  }
}

</mosaic_0001>

<bundles_post_ra>
// kernel: tpu_custom_call.1
= control target key start
LH: loop header
LB: loop body
LE: loop exit
PB: predicated region body
PF: predicated region fallthrough
CT: control target
= control target key end

     0   :  { %7 = vsyncpa [#allocation3], 0  ;;  %s681_s0 = inlined_call_operand.hbm [shape: bf16[128,128], index: 0, kind: input, shape index: {}]   ;;  %s682_s1 = inlined_call_operand.hbm [shape: bf16[128,128], index: 1, kind: input, shape index: {}]   ;;  %s683_s2 = inlined_call_operand.hbm [shape: bf16[128,128], index: 2, kind: output, shape index: {}]  }
   0x1   :  { %8 = vsyncpa [#allocation6], 0 }
   0x2   :  { %9 = vsyncpa [#allocation4], 0  ;;  %s616_s9 = smov [#allocation2]   ;;  %s544_s13 = scalar_lea.hbm %s681_s0, 1024 }
   0x3   :  { %s15_s10 = sshll.u32 %s616_s9, 4  ;;  %p545_p0 = scmp.ne.s32.totalorder %s681_s0, %s544_s13  ;;  %s16_s10 = int_to_ptr.vmem [resolvable:$true] %s15_s10 }
   0x4   :  { %p548_p1 = scmp.lt.u32.totalorder %s544_s13, %s681_s0 }
   0x6   :  { %p550_p2 = pnand %p548_p1, %p545_p0 }
   0x8   :  { %553 = shalt.err (!%p550_p2)
}
   0x9   :  { %s554_s18 = scalar_lea.vmem %s16_s10, 1024  ;;  %p559_p4 = scmp.lt.s32.totalorder %s16_s10, %s16_s10 }
   0xa   :  { %p555_p3 = scmp.ne.s32.totalorder %s16_s10, %s554_s18  ;;  %p560_p5 = scmp.lt.s32.totalorder %s554_s18, %s554_s18 }
   0xc   :  { %p561_p6 = por %p560_p5, %p559_p4 }
   0xe   :  { %p562_p7 = pnand %p561_p6, %p555_p3 }
  0x10   :  { %565 = shalt.err (!%p562_p7)
}
  0x11   :  { %s617_s19 = smov 64   ;;  %s618_s20 = smov 4  }
  0x12   :  { %21 = dma.hbm_to_vmem [thread:$0]  %s681_s0, 1024, %s16_s10, [#allocation3], %s617_s19, %s617_s19, %s618_s20  }
  0x13   :  { %s619_s23 = smov [#allocation5]   ;;  %s566_s27 = scalar_lea.hbm %s682_s1, 1024 }
  0x14   :  { %s27_s24 = sshll.u32 %s619_s23, 4  ;;  %p567_p8 = scmp.ne.s32.totalorder %s682_s1, %s566_s27  ;;  %s28_s24 = int_to_ptr.vmem [resolvable:$true] %s27_s24 }
  0x15   :  { %p570_p9 = scmp.lt.u32.totalorder %s566_s27, %s682_s1 }
  0x17   :  { %p572_p10 = pnand %p570_p9, %p567_p8 }
  0x19   :  { %575 = shalt.err (!%p572_p10)
}
  0x1a   :  { %s576_s4 = scalar_lea.vmem %s28_s24, 1024  ;;  %p581_p12 = scmp.lt.s32.totalorder %s28_s24, %s28_s24 }
  0x1b   :  { %p577_p11 = scmp.ne.s32.totalorder %s28_s24, %s576_s4  ;;  %p582_p13 = scmp.lt.s32.totalorder %s576_s4, %s576_s4 }
  0x1d   :  { %p583_p0 = por %p582_p13, %p581_p12 }
  0x1f   :  { %p584_p1 = pnand %p583_p0, %p577_p11 }
  0x21   :  { %587 = shalt.err (!%p584_p1)
}
  0x22   :  { %33 = dma.hbm_to_vmem [thread:$0]  %s682_s1, 1024, %s28_s24, [#allocation6], %s617_s19, %s617_s19, %s618_s20  }
  0x23   :  { %610 = dma.done.wait [#allocation3], 1024  }
  0x24   :  { %611 = vsyncadd [#allocation3], 4294966272 }
  0x25   :  { %612 = dma.done.wait [#allocation6], 1024  }
  0x26   :  { %613 = vsyncadd [#allocation6], 4294966272  ;;  %v528_v0 = vld [vmem:[#allocation5] sm:$0xff]   ;;  %v529_v1 = vld [vmem:[#allocation5 + $0x8] sm:$0xff]   ;;  %s620_s1 = smov [#allocation7]  }
  0x27   :  { %475 = vmatprep.subr.bf16.mxu0 %v528_v0  ;;  %507 = vmatprep.subr.bf16.mxu1 %v528_v0  ;;  %v530_v2 = vld [vmem:[#allocation5 + $0x10] sm:$0xff]   ;;  %v531_v3 = vld [vmem:[#allocation5 + $0x18] sm:$0xff]   ;;  %v536_v4 = vld [vmem:[#allocation2] sm:$0xff]   ;;  %s351_s6 = sshll.u32 %s620_s1, 4  ;;  %s352_s6 = int_to_ptr.vmem [resolvable:$true] %s351_s6 }
  0x28   :  { %476 = vmatpush3.bf16.msra.mxu0 %v528_v0  ;;  %515 = vmatpush3.bf16.msra.mxu1 %v528_v0  ;;  %v537_v5 = vld [vmem:[#allocation2 + $0x20] sm:$0xff]   ;;  %v533_v7 = vld [vmem:[#allocation5 + $0x28] sm:$0xff]   ;;  %v534_v8 = vld [vmem:[#allocation5 + $0x30] sm:$0xff]   ;;  %s588_s7 = scalar_lea.vmem %s352_s6, 1024  ;;  %p593_p3 = scmp.lt.s32.totalorder %s352_s6, %s352_s6 }
  0x29   :  { %477 = vmatprep.subr.bf16.mxu0 %v529_v1  ;;  %508 = vmatprep.subr.bf16.mxu1 %v529_v1  ;;  %v532_v6 = vld [vmem:[#allocation5 + $0x20] sm:$0xff]   ;;  %v535_v9 = vld [vmem:[#allocation5 + $0x38] sm:$0xff]   ;;  %v538_v10 = vld [vmem:[#allocation2 + $0x8] sm:$0xff]   ;;  %p589_p2 = scmp.ne.s32.totalorder %s352_s6, %s588_s7  ;;  %p594_p4 = scmp.lt.s32.totalorder %s588_s7, %s588_s7 }
  0x2a   :  { %491 = vmatprep.mubr.bf16.mxu0 %v536_v4  ;;  %499 = vmatprep.mubr.bf16.mxu1 %v537_v5  ;;  %v539_v11 = vld [vmem:[#allocation2 + $0x28] sm:$0xff]   ;;  %v540_v12 = vld [vmem:[#allocation2 + $0x10] sm:$0xff]   ;;  %v542_v14 = vld [vmem:[#allocation2 + $0x18] sm:$0xff]  }
  0x2b   :  { %v541_v13 = vld [vmem:[#allocation2 + $0x30] sm:$0xff]   ;;  %v543_v15 = vld [vmem:[#allocation2 + $0x38] sm:$0xff]   ;;  %p595_p5 = por %p594_p4, %p593_p3 }
  0x2c   :  { %478 = vmatpush3.bf16.msra.mxu0 %v529_v1  ;;  %516 = vmatpush3.bf16.msra.mxu1 %v529_v1 }
  0x2d   :  { %479 = vmatprep.subr.bf16.mxu0 %v530_v2  ;;  %509 = vmatprep.subr.bf16.mxu1 %v530_v2  ;;  %p596_p6 = pnand %p595_p5, %p589_p2 }
  0x30   :  { %480 = vmatpush3.bf16.msra.mxu0 %v530_v2  ;;  %517 = vmatpush3.bf16.msra.mxu1 %v530_v2 }
  0x31   :  { %481 = vmatprep.subr.bf16.mxu0 %v531_v3  ;;  %510 = vmatprep.subr.bf16.mxu1 %v531_v3 }
  0x34   :  { %482 = vmatpush3.bf16.msra.mxu0 %v531_v3  ;;  %518 = vmatpush3.bf16.msra.mxu1 %v531_v3 }
  0x35   :  { %483 = vmatprep.subr.bf16.mxu0 %v532_v6  ;;  %511 = vmatprep.subr.bf16.mxu1 %v532_v6 }
  0x38   :  { %484 = vmatpush3.bf16.msra.mxu0 %v532_v6  ;;  %519 = vmatpush3.bf16.msra.mxu1 %v532_v6 }
  0x39   :  { %485 = vmatprep.subr.bf16.mxu0 %v533_v7  ;;  %512 = vmatprep.subr.bf16.mxu1 %v533_v7 }
  0x3c   :  { %486 = vmatpush3.bf16.msra.mxu0 %v533_v7  ;;  %520 = vmatpush3.bf16.msra.mxu1 %v533_v7 }
  0x3d   :  { %487 = vmatprep.subr.bf16.mxu0 %v534_v8  ;;  %513 = vmatprep.subr.bf16.mxu1 %v534_v8 }
  0x40   :  { %488 = vmatpush3.bf16.msra.mxu0 %v534_v8  ;;  %521 = vmatpush3.bf16.msra.mxu1 %v534_v8 }
  0x41   :  { %489 = vmatprep.subr.bf16.mxu0 %v535_v9  ;;  %514 = vmatprep.subr.bf16.mxu1 %v535_v9 }
  0x44   :  { %490 = vmatpush3.bf16.msra.mxu0 %v535_v9  ;;  %522 = vmatpush3.bf16.msra.mxu1 %v535_v9 }
  0x47   :  { %492 = vmatmul.mubr.bf16.vlgmr.msra.gmra.mrb[0].mxu0 %v538_v10  ;;  %500 = vmatmul.mubr.bf16.vlgmr.msra.gmra.mrb[0].mxu1 %v539_v11 }
  0x48   :  { %495 = vmatprep.mubr.bf16.mxu0 %v540_v12  ;;  %503 = vmatprep.mubr.bf16.mxu1 %v541_v13 }
  0x4f   :  { %496 = vmatmul.mubr.bf16.gmra.mrb[4].mxu0 %v542_v14  ;;  %504 = vmatmul.mubr.bf16.gmra.mrb[4].mxu1 %v543_v15 }
 0x11a   :  { %v493_v16 = vpop.f32.mrb[0].mxu0  ;;  %v501_v17 = vpop.f32.mrb[0].mxu1 }
 0x11b   :  { %v203_v18 = vpop.f32.mrb[1].mxu0  ;;  %v235_v19 = vpop.f32.mrb[1].mxu1 }
 0x11c   :  { %v494_v20 = vpop.f32.mrb[2].mxu0  ;;  %v502_v21 = vpop.f32.mrb[2].mxu1 }
 0x11d   :  { %v420_v22 = vpack.c.bf16 %v494_v20, %v493_v16  ;;  %v440_v23 = vpack.c.bf16 %v502_v21, %v501_v17  ;;  %v206_v24 = vpop.f32.mrb[3].mxu0  ;;  %v238_v25 = vpop.f32.mrb[3].mxu1 }
 0x11e   :  { %v415_v26 = vpack.c.bf16 %v206_v24, %v203_v18  ;;  %v435_v27 = vpack.c.bf16 %v238_v25, %v235_v19 }
 0x11f   :  { %452 = vst [vmem:[#allocation7 + $0x8] sm:$0xff] %v420_v22   ;;  %456 = vst [vmem:[#allocation7 + $0x28] sm:$0xff] %v440_v23  }
 0x120   :  { %416 = vst [vmem:[#allocation7] sm:$0xff] %v415_v26   ;;  %455 = vst [vmem:[#allocation7 + $0x20] sm:$0xff] %v435_v27  }
 0x122   :  { %v497_v28 = vpop.f32.mrb[4].mxu0  ;;  %v505_v29 = vpop.f32.mrb[4].mxu1 }
 0x123   :  { %v219_v30 = vpop.f32.mrb[5].mxu0  ;;  %v251_v31 = vpop.f32.mrb[5].mxu1 }
 0x124   :  { %v498_v32 = vpop.f32.mrb[6].mxu0  ;;  %v506_v33 = vpop.f32.mrb[6].mxu1 }
 0x125   :  { %v430_v34 = vpack.c.bf16 %v498_v32, %v497_v28  ;;  %v450_v35 = vpack.c.bf16 %v506_v33, %v505_v29  ;;  %v222_v36 = vpop.f32.mrb[7].mxu0  ;;  %v254_v37 = vpop.f32.mrb[7].mxu1 }
 0x126   :  { %v425_v38 = vpack.c.bf16 %v222_v36, %v219_v30  ;;  %v445_v39 = vpack.c.bf16 %v254_v37, %v251_v31 }
 0x127   :  { %454 = vst [vmem:[#allocation7 + $0x18] sm:$0xff] %v430_v34   ;;  %458 = vst [vmem:[#allocation7 + $0x38] sm:$0xff] %v450_v35  }
 0x128   :  { %453 = vst [vmem:[#allocation7 + $0x10] sm:$0xff] %v425_v38   ;;  %457 = vst [vmem:[#allocation7 + $0x30] sm:$0xff] %v445_v39  }
 0x129   :  { %599 = shalt.err (!%p596_p6)
}
 0x12a   :  { %s600_s10 = scalar_lea.hbm %s683_s2, 1024 }
 0x12b   :  { %p601_p7 = scmp.ne.s32.totalorder %s683_s2, %s600_s10  ;;  %p604_p8 = scmp.lt.u32.totalorder %s600_s10, %s683_s2 }
 0x12d   :  { %p606_p9 = pnand %p604_p8, %p601_p7 }
 0x12f   :  { %609 = shalt.err (!%p606_p9)
}
 0x130   :  { %357 = dma.vmem_to_hbm [thread:$0]  %s352_s6, 1024, %s683_s2, [#allocation4], %s617_s19, %s617_s19, %s618_s20  }
 0x131   :  { %614 = dma.done.wait [#allocation4], 1024  }
 0x132   :  { %615 = vsyncadd [#allocation4], 4294966272 }
 0x133   :  { %361 = vsyncpa [#allocation3], 1 }
 0x134   :  { %362 = vsyncpa [#allocation6], 1 }
 0x135   :  { %363 = vsyncpa [#allocation4], 1 }

</bundles_post_ra>
